<compile_context>
chip_gen: v7x
topology: tpu7x:2x2x1
jax: 0.10.0
libtpu: 0.0.40
codegen_flags: <defaults>
</compile_context>

<pallas_src>
import jax
import jax.numpy as jnp
from jax import lax
from jax.experimental import pallas as pl
from jax.experimental.pallas import tpu as pltpu


def _round_up(x, m):
    return ((x + m - 1) // m) * m


def _conv1x1_kernel(x_ref, wt_ref, b_ref, z_ref):
    # x_ref:  (TM, K)   activations (f32 or compute dtype; cast in-kernel)
    # wt_ref: (K, TN)   W^T block in compute dtype (standard A @ B, no transpose)
    # b_ref:  (1, TN)   f32 bias row
    # z_ref:  (TM, TN)  output tile
    xb = x_ref[...].astype(wt_ref.dtype)
    acc = jnp.dot(xb, wt_ref[...], preferred_element_type=jnp.float32)
    z_ref[...] = (acc + b_ref[...]).astype(z_ref.dtype)


def conv1x1_forward(x, W, bias, *, compute_dtype=jnp.bfloat16):
    """Forward pass of the invertible 1x1 conv.

    Args:
      x:    (B, dim) float32
      W:    (dim, dim) float32 (orthogonal at init)
      bias: (dim,) float32
    Returns:
      z:   (B, dim)  = x @ W^T + bias  (== F.conv2d on NCHW (B,dim,1,1) then squeeze)
      det: (B, 1)    = log|det(W)| broadcast per batch element
    """
    B, dim = x.shape
    out_dtype = x.dtype
    cbytes = jnp.dtype(compute_dtype).itemsize
    obytes = jnp.dtype(out_dtype).itemsize

    # --- generation-aware budgets (trace-time HW query, safe fallback) ----
    try:
        vmem_cap = int(getattr(pltpu.get_tpu_info(), "vmem_capacity_bytes",
                               64 << 20))
    except Exception:
        vmem_cap = 64 << 20
    small_vmem = vmem_cap < (96 << 20)          # v7x-class: 64 MiB per TC
    if small_vmem:
        tn_cap, tm_cap = 512, 512
        vmem_budget = 24 << 20
        vmem_ceiling = 40 << 20
    else:                                       # v5e / v6e: 128 MiB
        tn_cap, tm_cap = 1024, 1024
        vmem_budget = 48 << 20
        vmem_ceiling = 80 << 20

    # --- lane/sublane-dense padded shapes ----------------------------------
    dim_p = _round_up(dim, 128)
    b_p = _round_up(B, 8)

    # --- tn: largest 128-multiple <= cap that divides dim_p (no ragged N) --
    tn = 128
    t = min(tn_cap, dim_p)
    t -= t % 128
    while t >= 128:
        if dim_p % t == 0:
            tn = t
            break
        t -= 128
    # keep the double-buffered W^T block within ~half the budget
    while tn > 128 and 2 * dim_p * tn * cbytes > vmem_budget // 2:
        tn //= 2
    grid_n = dim_p // tn

    # --- in-kernel cast of x when it is only streamed once or twice --------
    cast_in_kernel = grid_n <= 2
    xbytes = jnp.dtype(x.dtype).itemsize if cast_in_kernel else cbytes

    # --- tm from the remaining budget; align so stores stay unmasked -------
    w_buf = 2 * dim_p * tn * cbytes
    stream_budget = max(vmem_budget - w_buf, 2 << 20)
    per_row = 2 * dim_p * xbytes + 2 * tn * obytes + tn * 4   # x + out + f32 temp
    tm = int(stream_budget // per_row)
    tm = min(tm, tm_cap)
    if tm >= b_p:
        tm = b_p                                # single M block
    elif tm >= 256:
        tm = (tm // 256) * 256                  # MXU-tile aligned batch blocks
    else:
        tm = max(8, (tm // 8) * 8)
    b_p2 = _round_up(b_p, tm)                   # pad batch so tm divides exactly
    grid_m = b_p2 // tm

    total_vmem = (2 * tm * dim_p * xbytes                       # x (double buffered)
                  + w_buf                                       # W^T block
                  + 2 * tm * tn * obytes                        # out
                  + tm * tn * 4                                 # f32 dot result temp
                  + (tm * dim_p * cbytes if cast_in_kernel else 0)  # cast temp
                  + 2 * tn * 4)                                 # bias
    vmem_limit = int(min(max(total_vmem + (4 << 20), 16 << 20), vmem_ceiling))

    # --- operands -----------------------------------------------------------
    x_in = x if cast_in_kernel else x.astype(compute_dtype)
    if b_p2 != B or dim_p != dim:
        x_in = jnp.pad(x_in, ((0, b_p2 - B), (0, dim_p - dim)))

    w_t = W.astype(compute_dtype).T             # (K, N) — one-time HBM transpose
    if dim_p != dim:
        w_t = jnp.pad(w_t, ((0, dim_p - dim), (0, dim_p - dim)))

    b_f = bias.astype(jnp.float32)
    if dim_p != dim:
        b_f = jnp.pad(b_f, (0, dim_p - dim))
    b_row = b_f.reshape(1, dim_p)

    cost = pl.CostEstimate(
        flops=2 * b_p2 * dim_p * dim_p,
        transcendentals=0,
        bytes_accessed=(grid_n * b_p2 * dim_p * xbytes          # x streamed per N block
                        + dim_p * dim_p * cbytes                # W^T read once
                        + b_p2 * dim_p * obytes                 # output written once
                        + dim_p * 4),                           # bias
    )

    # Grid: (N blocks, M blocks) with M innermost -> the W^T block stays
    # VMEM-resident across the whole batch sweep (fetched once per N block).
    # TODO(synk): if an xprof trace shows exposed x DMA on v5e/v6e, add
    # pipeline_mode=pl.Buffered(3) on the x BlockSpec (plenty of VMEM headroom).
    z_pad = pl.pallas_call(
        _conv1x1_kernel,
        out_shape=jax.ShapeDtypeStruct((b_p2, dim_p), out_dtype),
        grid_spec=pltpu.PrefetchScalarGridSpec(
            num_scalar_prefetch=0,
            grid=(grid_n, grid_m),
            in_specs=[
                pl.BlockSpec((tm, dim_p), lambda n, m: (m, 0)),   # x
                pl.BlockSpec((dim_p, tn), lambda n, m: (0, n)),   # W^T (K, N)
                pl.BlockSpec((1, tn), lambda n, m: (0, n)),       # bias
            ],
            out_specs=pl.BlockSpec((tm, tn), lambda n, m: (m, n)),
        ),
        compiler_params=pltpu.CompilerParams(
            dimension_semantics=("parallel", "parallel"),
            vmem_limit_bytes=vmem_limit,
        ),
        cost_estimate=cost,
    )(x_in, w_t, b_row)

    z = z_pad[:B, :dim] if (b_p2 != B or dim_p != dim) else z_pad

    # TODO(synk): log|det(W)| requires an LU decomposition — no clean Pallas
    # primitive for it, so it is computed with plain JAX (f32 W) here.
    _, logabsdet = jnp.linalg.slogdet(W.astype(jnp.float32))
    det = logabsdet.astype(out_dtype) * jnp.ones((B, 1), dtype=out_dtype)
    return z, det


if __name__ == "__main__":
    key = jax.random.PRNGKey(0)
    B, dim = 8, 32

    k_w, k_x = jax.random.split(key)
    # Deterministic orthogonal init (matches scipy QR of a random normal matrix).
    W, _ = jnp.linalg.qr(jax.random.normal(k_w, (dim, dim), dtype=jnp.float32))
    W = W.astype(jnp.float32)
    bias = jnp.zeros((dim,), dtype=jnp.float32)

    x = jax.random.normal(k_x, (B, dim), dtype=jnp.float32)

    z, det = conv1x1_forward(x, W, bias)
    jax.block_until_ready((z, det))

    # Reference with the same bf16 operand rounding + f32 accumulation.
    xr = x.astype(jnp.bfloat16).astype(jnp.float32)
    Wr = W.astype(jnp.bfloat16).astype(jnp.float32)
    z_ref = jnp.dot(xr, Wr.T, precision=lax.Precision.HIGHEST) + bias
    _, logabsdet = jnp.linalg.slogdet(W)
    det_ref = logabsdet * jnp.ones((B, 1), dtype=x.dtype)

    assert z.shape == (B, dim) and det.shape == (B, 1)
    assert jnp.allclose(z, z_ref, atol=1e-4, rtol=1e-4)
    assert jnp.allclose(det, det_ref, atol=1e-5)

    print("KERNEL_OK")
</pallas_src>

<mosaic_0001>
module attributes {stable_mosaic.version = 11 : i64} {
  func.func @_conv1x1_kernel(%arg0: i32, %arg1: i32, %arg2: memref<8x128xf32, #tpu.memory_space<vmem>>, %arg3: memref<128x128xbf16, #tpu.memory_space<vmem>>, %arg4: memref<1x128xf32, #tpu.memory_space<vmem>>, %arg5: memref<8x128xf32, #tpu.memory_space<vmem>>) attributes {dimension_semantics = [#tpu.dimension_semantics<parallel>, #tpu.dimension_semantics<parallel>], iteration_bounds = array<i64: 1, 1>, scalar_prefetch = 0 : i64, scratch_operands = 0 : i64, tpu.core_type = #tpu.core_type<tc>, window_params = [{transform_indices = @transform_0, window_bounds = array<i64: 8, 128>}, {transform_indices = @transform_1, window_bounds = array<i64: 128, 128>}, {transform_indices = @transform_2, window_bounds = array<i64: 1, 128>}, {transform_indices = @transform_3, window_bounds = array<i64: 8, 128>}]} {
    %c0 = arith.constant 0 : index
    %c0_0 = arith.constant 0 : index
    %0 = vector.load %arg2[%c0, %c0_0] : memref<8x128xf32, #tpu.memory_space<vmem>>, vector<8x128xf32>
    %1 = arith.truncf %0 : vector<8x128xf32> to vector<8x128xbf16>
    %c0_1 = arith.constant 0 : index
    %c0_2 = arith.constant 0 : index
    %2 = vector.load %arg3[%c0_1, %c0_2] : memref<128x128xbf16, #tpu.memory_space<vmem>>, vector<128x128xbf16>
    %cst = arith.constant dense<0.000000e+00> : vector<8x128xf32>
    %3 = tpu.matmul %1, %2, %cst {dimension_numbers = #tpu.dot_dimension_numbers<[1], [0], [0], [1], [0, 0, 1, 1], [], []>} : vector<8x128xbf16>, vector<128x128xbf16>, vector<8x128xf32> -> vector<8x128xf32>
    %c0_3 = arith.constant 0 : index
    %c0_4 = arith.constant 0 : index
    %4 = vector.load %arg4[%c0_3, %c0_4] : memref<1x128xf32, #tpu.memory_space<vmem>>, vector<1x128xf32>
    %5 = vector.broadcast %4 : vector<1x128xf32> to vector<8x128xf32>
    %6 = arith.addf %3, %5 : vector<8x128xf32>
    %c0_5 = arith.constant 0 : index
    %c0_6 = arith.constant 0 : index
    %7 = vector.load %arg5[%c0_5, %c0_6] : memref<8x128xf32, #tpu.memory_space<vmem>>, vector<8x128xf32>
    tpu.vector_store %arg5[%c0_5, %c0_6], %6 {strides = array<i32>} : memref<8x128xf32, #tpu.memory_space<vmem>>, vector<8x128xf32>,
    return
  }
  func.func @transform_0(%arg0: i32, %arg1: i32) -> (i32, i32) {
    %c0_i32 = arith.constant 0 : i32
    %c0_i32_0 = arith.constant 0 : i32
    return %arg1, %c0_i32 : i32, i32
  }
  func.func @transform_1(%arg0: i32, %arg1: i32) -> (i32, i32) {
    %c0_i32 = arith.constant 0 : i32
    %c0_i32_0 = arith.constant 0 : i32
    return %c0_i32, %arg0 : i32, i32
  }
  func.func @transform_2(%arg0: i32, %arg1: i32) -> (i32, i32) {
    %c0_i32 = arith.constant 0 : i32
    %c0_i32_0 = arith.constant 0 : i32
    return %c0_i32, %arg0 : i32, i32
  }
  func.func @transform_3(%arg0: i32, %arg1: i32) -> (i32, i32) {
    %c0_i32 = arith.constant 0 : i32
    return %arg1, %arg0 : i32, i32
  }
}

</mosaic_0001>

<bundles_post_ra>
// kernel: tpu_custom_call.1
= control target key start
LH: loop header
LB: loop body
LE: loop exit
PB: predicated region body
PF: predicated region fallthrough
CT: control target
= control target key end

     0   :  { %8 = vsyncpa [#allocation3], 0  ;;  %s370_s0 = inlined_call_operand.hbm [shape: f32[8,128], index: 0, kind: input, shape index: {}]   ;;  %s371_s1 = inlined_call_operand.hbm [shape: bf16[128,128], index: 1, kind: input, shape index: {}]   ;;  %s372_s2 = inlined_call_operand.vmem [shape: f32[1,128], index: 2, kind: input, shape index: {}]   ;;  %s373_s3 = inlined_call_operand.hbm [shape: f32[8,128], index: 3, kind: output, shape index: {}]  }
   0x1   :  { %9 = vsyncpa [#allocation6], 0 }
   0x2   :  { %10 = vsyncpa [#allocation4], 0  ;;  %s297_s12 = smov [#allocation2]   ;;  %s298_s14 = smov [#allocation5]  }
   0x3   :  { %s17_s13 = sshll.u32 %s297_s12, 4  ;;  %s26_s15 = sshll.u32 %s298_s14, 4  ;;  %s18_s13 = int_to_ptr.vmem [resolvable:$true] %s17_s13  ;;  %s324_s15 = int_to_ptr.vmem [resolvable:$true] %s26_s15 }
   0x4   :  { %s225_s18 = scalar_lea.hbm %s370_s0, 128 }
   0x5   :  { %p226_p0 = scmp.ne.s32.totalorder %s370_s0, %s225_s18  ;;  %p229_p1 = scmp.lt.u32.totalorder %s225_s18, %s370_s0 }
   0x7   :  { %p231_p2 = pnand %p229_p1, %p226_p0 }
   0x9   :  { %234 = shalt.err (!%p231_p2)
}
   0xa   :  { %s235_s23 = scalar_lea.vmem %s18_s13, 128  ;;  %p240_p4 = scmp.lt.s32.totalorder %s18_s13, %s18_s13 }
   0xb   :  { %p236_p3 = scmp.ne.s32.totalorder %s18_s13, %s235_s23  ;;  %p241_p5 = scmp.lt.s32.totalorder %s235_s23, %s235_s23 }
   0xd   :  { %p242_p6 = por %p241_p5, %p240_p4 }
   0xf   :  { %p243_p7 = pnand %p242_p6, %p236_p3 }
  0x11   :  { %246 = shalt.err (!%p243_p7)
}
  0x12   :  { %20 = dma.hbm_to_vmem [thread:$0]  %s370_s0, 128, %s18_s13, [#allocation3]  }
  0x13   :  { %s247_s28 = scalar_lea.hbm %s371_s1, 1024 }
  0x14   :  { %p248_p8 = scmp.ne.s32.totalorder %s371_s1, %s247_s28  ;;  %p251_p9 = scmp.lt.u32.totalorder %s247_s28, %s371_s1 }
  0x16   :  { %p253_p10 = pnand %p251_p9, %p248_p8 }
  0x18   :  { %256 = shalt.err (!%p253_p10)
}
  0x19   :  { %s257_s6 = scalar_lea.vmem %s324_s15, 1024  ;;  %p262_p12 = scmp.lt.s32.totalorder %s324_s15, %s324_s15 }
  0x1a   :  { %p258_p11 = scmp.ne.s32.totalorder %s324_s15, %s257_s6  ;;  %p263_p13 = scmp.lt.s32.totalorder %s257_s6, %s257_s6 }
  0x1c   :  { %p264_p0 = por %p263_p13, %p262_p12 }
  0x1e   :  { %p265_p1 = pnand %p264_p0, %p258_p11 }
  0x20   :  { %268 = shalt.err (!%p265_p1)
}
  0x21   :  { %s299_s0 = smov 64   ;;  %s300_s7 = smov 4  }
  0x22   :  { %32 = dma.hbm_to_vmem [thread:$0]  %s371_s1, 1024, %s324_s15, [#allocation6], %s299_s0, %s299_s0, %s300_s7  }
  0x23   :  { %291 = dma.done.wait [#allocation3], 128  }
  0x24   :  { %292 = vsyncadd [#allocation3], 4294967168 }
  0x25   :  { %293 = dma.done.wait [#allocation6], 1024  }
  0x26   :  { %294 = vsyncadd [#allocation6], 4294966272  ;;  %v301_v0 = vmov 0.0   ;;  %vm302_vm0 = vmmov 0   ;;  %v217_v1 = vld [vmem:[#allocation5] sm:$0xff]   ;;  %v218_v2 = vld [vmem:[#allocation5 + $0x8] sm:$0xff]  }
  0x27   :  { %190 = vmatprep.subr.bf16.mxu0 %v301_v0  ;;  %206 = vmatprep.mubr.msk.bf16.mxu0 %vm302_vm0, %v301_v0  ;;  %v219_v3 = vld [vmem:[#allocation5 + $0x10] sm:$0xff]   ;;  %v220_v4 = vld [vmem:[#allocation5 + $0x18] sm:$0xff]   ;;  %v221_v5 = vld [vmem:[#allocation5 + $0x20] sm:$0xff]   ;;  %s303_s11 = smov [#allocation7]  }
  0x28   :  { %191 = vmatpush3.bf16.msra.mxu0 %v217_v1  ;;  %v222_v6 = vld [vmem:[#allocation5 + $0x28] sm:$0xff]   ;;  %v223_v7 = vld [vmem:[#allocation5 + $0x30] sm:$0xff]   ;;  %v224_v8 = vld [vmem:[#allocation5 + $0x38] sm:$0xff]   ;;  %s162_s12 = sshll.u32 %s303_s11, 4  ;;  %s163_s12 = int_to_ptr.vmem [resolvable:$true] %s162_s12 }
  0x29   :  { %192 = vmatprep.subr.bf16.mxu0 %v301_v0  ;;  %v42_v9 = vld [vmem:[#allocation2] sm:$0xff]  ;;  %s269_s13 = scalar_lea.vmem %s163_s12, 128  ;;  %p274_p3 = scmp.lt.s32.totalorder %s163_s12, %s163_s12 }
  0x2a   :  { %v43_v10 = vpack.c.bf16 %v42_v9, %v42_v9  ;;  %v172_v11 = vld [vmem:[%s372_s2] ss:$0 sm:$0xff]  ;;  %p270_p2 = scmp.ne.s32.totalorder %s163_s12, %s269_s13  ;;  %p275_p4 = scmp.lt.s32.totalorder %s269_s13, %s269_s13 }
  0x2c   :  { %193 = vmatpush3.bf16.msra.mxu0 %v218_v2  ;;  %p276_p5 = por %p275_p4, %p274_p3 }
  0x2d   :  { %194 = vmatprep.subr.bf16.mxu0 %v301_v0 }
  0x2e   :  { %p277_p6 = pnand %p276_p5, %p270_p2 }
  0x30   :  { %195 = vmatpush3.bf16.msra.mxu0 %v219_v3 }
  0x31   :  { %196 = vmatprep.subr.bf16.mxu0 %v301_v0 }
  0x34   :  { %197 = vmatpush3.bf16.msra.mxu0 %v220_v4 }
  0x35   :  { %198 = vmatprep.subr.bf16.mxu0 %v301_v0 }
  0x38   :  { %199 = vmatpush3.bf16.msra.mxu0 %v221_v5 }
  0x39   :  { %200 = vmatprep.subr.bf16.mxu0 %v301_v0 }
  0x3c   :  { %201 = vmatpush3.bf16.msra.mxu0 %v222_v6 }
  0x3d   :  { %202 = vmatprep.subr.bf16.mxu0 %v301_v0 }
  0x40   :  { %203 = vmatpush3.bf16.msra.mxu0 %v223_v7 }
  0x41   :  { %204 = vmatprep.subr.bf16.mxu0 %v301_v0 }
  0x44   :  { %205 = vmatpush3.bf16.msra.mxu0 %v224_v8 }
  0x47   :  { %207 = vmatmul.mubr.bf16.vlgmr.msra.gmra.mrb[0].mxu0 %v43_v10 }
 0x11a   :  { %v149_v12 = vpop.f32.mrb[0].mxu0 }
 0x11b   :  { %v150_v13 = vadd.f32 %v172_v11, %v149_v12  ;;  %v208_v14 = vpop.f32.mrb[1].mxu0 }
 0x11c   :  { %v152_v15 = vpop.f32.mrb[2].mxu0 }
 0x11d   :  { %155 = vst [vmem:[#allocation7] sm:$0xff] %v150_v13  ;;  %v209_v16 = vpop.f32.mrb[3].mxu0 }
 0x11e   :  { %280 = shalt.err (!%p277_p6)
}
 0x11f   :  { %s281_s2 = scalar_lea.hbm %s373_s3, 128 }
 0x120   :  { %p282_p7 = scmp.ne.s32.totalorder %s373_s3, %s281_s2  ;;  %p285_p8 = scmp.lt.u32.totalorder %s281_s2, %s373_s3 }
 0x122   :  { %p287_p9 = pnand %p285_p8, %p282_p7 }
 0x124   :  { %290 = shalt.err (!%p287_p9)
}
 0x125   :  { %165 = dma.vmem_to_hbm [thread:$0]  %s163_s12, 128, %s373_s3, [#allocation4]  }
 0x126   :  { %295 = dma.done.wait [#allocation4], 128  }
 0x127   :  { %296 = vsyncadd [#allocation4], 4294967168 }
 0x128   :  { %169 = vsyncpa [#allocation3], 1 }
 0x129   :  { %170 = vsyncpa [#allocation6], 1 }
 0x12a   :  { %171 = vsyncpa [#allocation4], 1 }

</bundles_post_ra>
